<compile_context>
chip_gen: v5e
topology: v5e:2x2
jax: 0.10.0
libtpu: 0.0.40
codegen_flags: <defaults>
</compile_context>

<pallas_src>
import jax
import jax.numpy as jnp
from jax.experimental import pallas as pl
from jax.experimental.pallas import tpu as pltpu

_LANE = 128
_SUBLANE = 8
_MIN_BATCH_TILE_O1 = _LANE * _SUBLANE  # 1024: smallest multi-step batch tile for
                                       # the lane-packed (Bq, 128) output layout.


def _round_up(x, m):
    return ((x + m - 1) // m) * m


def _cdiv(a, b):
    return (a + b - 1) // b


# ---------------------------------------------------------------------------
# Kernels
# ---------------------------------------------------------------------------

def _mlp_kernel_o1(x_ref, w1_ref, b1_ref, w2r_ref, b2_ref, o_ref):
    """n_output == 1 (regression head).

    Hidden layer on the MXU (bf16 operands, f32 accumulation); output layer is
    a VPU multiply + XLU lane-reduce (no N=1 MXU push).  The per-row results
    are produced directly in a lane-packed (tb//128, 128) layout (128 batch
    rows per output row) so the HBM store is lane-dense with zero write
    amplification.
    """
    h = jnp.dot(x_ref[...], w1_ref[...], preferred_element_type=jnp.float32)
    h = jnp.maximum(h + b1_ref[...], 0.0)          # bias + relu on the VPU (f32)
    tb, hp = h.shape
    p = h * w2r_ref[...]                           # (tb, Hp) * (1, Hp) broadcast
    # (tb, Hp) -> (tb//128, 128, Hp) keeps the lane dim and only regroups the
    # leading/sublane dims (128 is a multiple of the 8-row sublane tile), so it
    # is a pure metadata reshape; the lane reduce then lands the result already
    # packed 128 batch rows per output row.
    y = jnp.sum(p.reshape(tb // _LANE, _LANE, hp), axis=-1)
    o_ref[...] = (y + b2_ref[0, 0]).astype(o_ref.dtype)   # b2: SMEM scalar


def _mlp_kernel_mxu(x_ref, w1_ref, b1_ref, w2_ref, b2_ref, o_ref, acc_ref):
    """General n_output (padded to 128 lanes): two MXU matmuls.

    Hp (= K of the second matmul) and Op are tiled by the grid; partial
    products accumulate in an f32 VMEM scratch.  relu() is per hidden unit, so
    each K-slice of the hidden activations is recomputed from the full (small)
    feature dim — w1/b1 slices follow the k axis.
    """
    k = pl.program_id(2)

    @pl.when(k == 0)
    def _():
        acc_ref[...] = jnp.zeros_like(acc_ref)

    h = jnp.dot(x_ref[...], w1_ref[...], preferred_element_type=jnp.float32)
    h = jnp.maximum(h + b1_ref[...], 0.0)
    acc_ref[...] += jnp.dot(h.astype(jnp.bfloat16), w2_ref[...],
                            preferred_element_type=jnp.float32)

    @pl.when(k == pl.num_programs(2) - 1)
    def _():
        o_ref[...] = (acc_ref[...] + b2_ref[...]).astype(o_ref.dtype)


# ---------------------------------------------------------------------------
# Parameter preparation (padding / casting done once, amortized across calls)
# ---------------------------------------------------------------------------

def prepare_params(w1, b1, w2, b2):
    """w1:(F,H), b1:(H,)|(1,H), w2:(H,O), b2:(O,)|(1,O) -> kernel-ready params.

    * H (and O when O > 1) are zero-padded to multiples of 128 lanes (zero w2
      rows / w1 cols make padded hidden units contribute nothing).
    * MXU operands (w1, and w2 when O > 1) are stored as bf16; biases stay f32
      (added after the f32-accumulating matmul).
    * For O == 1 the output weights are an f32 (1, Hp) row for the VPU path and
      b2 is a (1, 1) SMEM scalar.
    """
    w1 = jnp.asarray(w1, jnp.float32)
    b1 = jnp.asarray(b1, jnp.float32).reshape(1, -1)
    w2 = jnp.asarray(w2, jnp.float32)
    b2 = jnp.asarray(b2, jnp.float32).reshape(1, -1)

    F, H = w1.shape
    O = w2.shape[1]
    Hp = _round_up(H, _LANE)

    w1p = jnp.zeros((F, Hp), jnp.bfloat16).at[:, :H].set(w1.astype(jnp.bfloat16))
    b1p = jnp.zeros((1, Hp), jnp.float32).at[:, :H].set(b1)

    if O == 1:
        w2p = jnp.zeros((1, Hp), jnp.float32).at[0, :H].set(w2[:, 0])
        b2p = b2.reshape(1, 1)
    else:
        Op = _round_up(O, _LANE)
        w2p = jnp.zeros((Hp, Op), jnp.bfloat16).at[:H, :O].set(w2.astype(jnp.bfloat16))
        b2p = jnp.zeros((1, Op), jnp.float32).at[:, :O].set(b2)

    return {"w1": w1p, "b1": b1p, "w2": w2p, "b2": b2p,
            "n_feature": F, "n_hidden": H, "n_output": O}


# ---------------------------------------------------------------------------
# Tiling helpers
# ---------------------------------------------------------------------------

def _pick_divisor_tile(dim, cap=512):
    """Largest multiple-of-128 divisor of `dim` that is <= max(cap, 128)."""
    t = max(_LANE, (min(dim, cap) // _LANE) * _LANE)
    while dim % t:
        t -= _LANE
    return t


def _batch_tiling_o1(B, batch_tile):
    """Batch tile for the lane-packed O==1 path.

    Output rows pack 128 batch rows each, so a tile is either the whole
    (128-rounded) batch, or a multiple of 1024 rows (8 sublanes x 128 lanes)
    when the grid has several steps.  The tile is capped so batches larger than
    one tile give >= 2 "parallel" grid steps (v7x has two TensorCores).
    Returns (rows_per_tile, packed_output_rows Bq).
    """
    Bq = _cdiv(B, _LANE)
    rows = Bq * _LANE
    if rows <= _MIN_BATCH_TILE_O1:
        return rows, Bq                         # single tile == full output
    units = _cdiv(rows, _MIN_BATCH_TILE_O1)     # 1024-row units of work
    max_units = max(1, batch_tile // _MIN_BATCH_TILE_O1)
    upt = max(1, min(max_units, units // 2))    # >= 2 grid steps when possible
    return upt * _MIN_BATCH_TILE_O1, Bq


def _vmem_limit(est_bytes):
    # Raise the scoped-VMEM ceiling when the tile footprint needs it (v5e's
    # default is only 16 MiB); never below the 32 MiB v6e/v7x default, never
    # above v7x's 64 MiB physical VMEM.
    return int(min(64 << 20, max(32 << 20, 1.5 * est_bytes)))


# ---------------------------------------------------------------------------
# Forward
# ---------------------------------------------------------------------------

def net_forward(x, params, *, batch_tile=1024):
    """x: (B, F) -> (B, O) float32 (forward of the PyTorch Net module).

    On v6e (128 MiB VMEM) `batch_tile=2048` is a reasonable bump for the
    O == 1 path; the default 1024 is safe on all generations.
    """
    B, F = x.shape
    assert F == params["n_feature"]
    O = params["n_output"]
    w1, b1, w2, b2 = params["w1"], params["b1"], params["w2"], params["b2"]
    Hp = w1.shape[1]

    if x.dtype != jnp.bfloat16:
        # bf16 is the native MXU input dtype and halves the x DMA stream inside
        # the kernel; accumulation stays f32.  Producers that can emit bf16
        # directly should do so and skip this cast pass.
        x = x.astype(jnp.bfloat16)

    if O == 1:
        tb, Bq = _batch_tiling_o1(B, batch_tile)
        grid = (_cdiv(Bq * _LANE, tb),)
        const2 = lambda i: (0, 0)                 # weights: VMEM-resident block

        est = (2 * (tb * F * 2 + (tb // _LANE) * _LANE * 4)      # x + out tiles
               + 2 * (F * Hp * 2 + 2 * Hp * 4 + 128)             # weights/biases
               + 2 * tb * Hp * 4)                                # h / p f32 temps

        out = pl.pallas_call(
            _mlp_kernel_o1,
            out_shape=jax.ShapeDtypeStruct((Bq, _LANE), jnp.float32),
            grid=grid,
            in_specs=[
                pl.BlockSpec((tb, F), lambda i: (i, 0)),
                pl.BlockSpec((F, Hp), const2),
                pl.BlockSpec((1, Hp), const2),
                pl.BlockSpec((1, Hp), const2),
                pl.BlockSpec(memory_space=pltpu.MemorySpace.SMEM),   # b2 scalar
            ],
            out_specs=pl.BlockSpec((tb // _LANE, _LANE), lambda i: (i, 0)),
            compiler_params=pltpu.CompilerParams(
                dimension_semantics=("parallel",),
                vmem_limit_bytes=_vmem_limit(est)),
        )(x, w1, b1, w2, b2)
        # (Bq, 128) lane-packed -> (Bq*128, 1); slice off ragged tail rows only.
        return out.reshape(Bq * _LANE, 1)[:B]

    # ---- general n_output path: tiled MXU matmuls with f32 accumulator ----
    Op = w2.shape[1]
    tn = _pick_divisor_tile(Op)
    tk = _pick_divisor_tile(Hp)
    tb = min(_round_up(batch_tile, _SUBLANE), _round_up(B, _SUBLANE))
    nn, nk = Op // tn, Hp // tk
    if nn == 1 and _cdiv(B, tb) == 1 and B > 16 * _SUBLANE:
        # Give v7x's second TensorCore a parallel grid step to work on.
        tb = _round_up(_cdiv(B, 2), _SUBLANE)
    nb = _cdiv(B, tb)
    grid = (nb, nn, nk)

    est = (2 * (tb * F * 2 + tb * tn * 4)
           + 2 * (F * tk * 2 + tk * 4 + tk * tn * 2 + tn * 4)
           + tb * tn * 4                                         # accumulator
           + 2 * tb * tk * 4)                                    # h temporaries

    out = pl.pallas_call(
        _mlp_kernel_mxu,
        out_shape=jax.ShapeDtypeStruct((B, Op), jnp.float32),
        grid=grid,
        in_specs=[
            pl.BlockSpec((tb, F), lambda i, n, k: (i, 0)),
            pl.BlockSpec((F, tk), lambda i, n, k: (0, k)),
            pl.BlockSpec((1, tk), lambda i, n, k: (0, k)),
            pl.BlockSpec((tk, tn), lambda i, n, k: (k, n)),
            pl.BlockSpec((1, tn), lambda i, n, k: (0, n)),
        ],
        out_specs=pl.BlockSpec((tb, tn), lambda i, n, k: (i, n)),
        scratch_shapes=[pltpu.VMEM((tb, tn), jnp.float32)],
        compiler_params=pltpu.CompilerParams(
            dimension_semantics=("parallel", "parallel", "arbitrary"),
            vmem_limit_bytes=_vmem_limit(est)),
    )(x, w1, b1, w2, b2)
    return out[:, :O]


# ---------------------------------------------------------------------------
# Init + demo
# ---------------------------------------------------------------------------

def init_linear(key, fan_in, fan_out):
    """PyTorch-style init U(-1/sqrt(fan_in), 1/sqrt(fan_in)); W as (in, out)."""
    kw, kb = jax.random.split(key)
    bound = 1.0 / jnp.sqrt(jnp.float32(fan_in))
    w = jax.random.uniform(kw, (fan_in, fan_out), jnp.float32, -bound, bound)
    b = jax.random.uniform(kb, (1, fan_out), jnp.float32, -bound, bound)
    return w, b


if __name__ == "__main__":
    # Small regression-style shapes consistent with the module:
    # Net(n_feature=8, n_hidden=32, n_output=1), batch=16.
    batch, n_feature, n_hidden, n_output = 16, 8, 32, 1

    key = jax.random.PRNGKey(0)
    kx, k1, k2 = jax.random.split(key, 3)

    x = jax.random.normal(kx, (batch, n_feature), jnp.float32)
    w1, b1 = init_linear(k1, n_feature, n_hidden)
    w2, b2 = init_linear(k2, n_hidden, n_output)

    params = prepare_params(w1, b1, w2, b2)
    out = jax.block_until_ready(net_forward(x, params))

    # Pure-JAX reference of the forward semantics (unpadded f32 weights).
    ref = jnp.maximum(x @ w1 + b1, 0.0) @ w2 + b2
    assert out.shape == (batch, n_output)
    # bf16 MXU operands with f32 accumulation -> loosened tolerance.
    assert jnp.allclose(out, ref, atol=5e-2, rtol=5e-2), \
        float(jnp.max(jnp.abs(out - ref)))

    # Also exercise the tiled-MXU (n_output > 1) path once.
    n_output2 = 4
    k3, _ = jax.random.split(jax.random.PRNGKey(1))
    w2b, b2b = init_linear(k3, n_hidden, n_output2)
    params2 = prepare_params(w1, b1, w2b, b2b)
    out2 = jax.block_until_ready(net_forward(x, params2))
    ref2 = jnp.maximum(x @ w1 + b1, 0.0) @ w2b + b2b
    assert out2.shape == (batch, n_output2)
    assert jnp.allclose(out2, ref2, atol=5e-2, rtol=5e-2), \
        float(jnp.max(jnp.abs(out2 - ref2)))

    print("KERNEL_OK")
</pallas_src>

<mosaic_0001>
module attributes {stable_mosaic.version = 11 : i64} {
  func.func @_mlp_kernel_o1(%arg0: i32, %arg1: memref<128x8xbf16, #tpu.memory_space<vmem>>, %arg2: memref<8x128xbf16, #tpu.memory_space<vmem>>, %arg3: memref<1x128xf32, #tpu.memory_space<vmem>>, %arg4: memref<1x128xf32, #tpu.memory_space<vmem>>, %arg5: memref<1x1xf32, #tpu.memory_space<smem>>, %arg6: memref<1x128xf32, #tpu.memory_space<vmem>>) attributes {dimension_semantics = [#tpu.dimension_semantics<parallel>], iteration_bounds = array<i64: 1>, scalar_prefetch = 0 : i64, scratch_operands = 0 : i64, tpu.core_type = #tpu.core_type<tc>, window_params = [{transform_indices = @transform_0, window_bounds = array<i64: 128, 8>}, {pipeline_mode = #tpu.pipeline_mode<synchronous>, transform_indices = @transform_1, window_bounds = array<i64: 8, 128>}, {pipeline_mode = #tpu.pipeline_mode<synchronous>, transform_indices = @transform_2, window_bounds = array<i64: 1, 128>}, {pipeline_mode = #tpu.pipeline_mode<synchronous>, transform_indices = @transform_3, window_bounds = array<i64: 1, 128>}, {transform_indices = @transform_4, window_bounds = array<i64: 1, 1>}, {transform_indices = @transform_5, window_bounds = array<i64: 1, 128>}]} {
    %c0 = arith.constant 0 : index
    %c0_0 = arith.constant 0 : index
    %0 = vector.load %arg1[%c0, %c0_0] : memref<128x8xbf16, #tpu.memory_space<vmem>>, vector<128x8xbf16>
    %c0_1 = arith.constant 0 : index
    %c0_2 = arith.constant 0 : index
    %1 = vector.load %arg2[%c0_1, %c0_2] : memref<8x128xbf16, #tpu.memory_space<vmem>>, vector<8x128xbf16>
    %cst = arith.constant dense<0.000000e+00> : vector<128x128xf32>
    %2 = tpu.matmul %0, %1, %cst {dimension_numbers = #tpu.dot_dimension_numbers<[1], [0], [0], [1], [0, 0, 1, 1], [], []>} : vector<128x8xbf16>, vector<8x128xbf16>, vector<128x128xf32> -> vector<128x128xf32>
    %c0_3 = arith.constant 0 : index
    %c0_4 = arith.constant 0 : index
    %3 = vector.load %arg3[%c0_3, %c0_4] : memref<1x128xf32, #tpu.memory_space<vmem>>, vector<1x128xf32>
    %4 = vector.broadcast %3 : vector<1x128xf32> to vector<128x128xf32>
    %5 = arith.addf %2, %4 : vector<128x128xf32>
    %cst_5 = arith.constant 0.000000e+00 : f32
    %6 = vector.broadcast %cst_5 : f32 to vector<128x128xf32>
    %7 = arith.maximumf %5, %6 : vector<128x128xf32>
    %c0_6 = arith.constant 0 : index
    %c0_7 = arith.constant 0 : index
    %8 = vector.load %arg4[%c0_6, %c0_7] : memref<1x128xf32, #tpu.memory_space<vmem>>, vector<1x128xf32>
    %9 = vector.broadcast %8 : vector<1x128xf32> to vector<128x128xf32>
    %10 = arith.mulf %7, %9 : vector<128x128xf32>
    %11 = vector.shape_cast %10 : vector<128x128xf32> to vector<1x128x128xf32>
    %cst_8 = arith.constant dense<0.000000e+00> : vector<1x128xf32>
    %12 = vector.multi_reduction <add>, %11, %cst_8 [2] : vector<1x128x128xf32> to vector<1x128xf32>
    %c0_9 = arith.constant 0 : index
    %c0_10 = arith.constant 0 : index
    %13 = memref.load %arg5[%c0_9, %c0_10] : memref<1x1xf32, #tpu.memory_space<smem>>
    %14 = vector.broadcast %13 : f32 to vector<1x128xf32>
    %15 = arith.addf %12, %14 : vector<1x128xf32>
    %c0_11 = arith.constant 0 : index
    %c0_12 = arith.constant 0 : index
    %16 = vector.load %arg6[%c0_11, %c0_12] : memref<1x128xf32, #tpu.memory_space<vmem>>, vector<1x128xf32>
    tpu.vector_store %arg6[%c0_11, %c0_12], %15 {strides = array<i32>} : memref<1x128xf32, #tpu.memory_space<vmem>>, vector<1x128xf32>,
    return
  }
  func.func @transform_0(%arg0: i32) -> (i32, i32) {
    %c0_i32 = arith.constant 0 : i32
    %c0_i32_0 = arith.constant 0 : i32
    return %arg0, %c0_i32 : i32, i32
  }
  func.func @transform_1(%arg0: i32) -> (i32, i32) {
    %c0_i32 = arith.constant 0 : i32
    %c0_i32_0 = arith.constant 0 : i32
    %c0_i32_1 = arith.constant 0 : i32
    return %c0_i32, %c0_i32_0 : i32, i32
  }
  func.func @transform_2(%arg0: i32) -> (i32, i32) {
    %c0_i32 = arith.constant 0 : i32
    %c0_i32_0 = arith.constant 0 : i32
    %c0_i32_1 = arith.constant 0 : i32
    return %c0_i32, %c0_i32_0 : i32, i32
  }
  func.func @transform_3(%arg0: i32) -> (i32, i32) {
    %c0_i32 = arith.constant 0 : i32
    %c0_i32_0 = arith.constant 0 : i32
    %c0_i32_1 = arith.constant 0 : i32
    return %c0_i32, %c0_i32_0 : i32, i32
  }
  func.func @transform_4(%arg0: i32) -> (i32, i32) {
    %c0_i32 = arith.constant 0 : i32
    %c0_i32_0 = arith.constant 0 : i32
    %c0_i32_1 = arith.constant 0 : i32
    return %c0_i32, %c0_i32_0 : i32, i32
  }
  func.func @transform_5(%arg0: i32) -> (i32, i32) {
    %c0_i32 = arith.constant 0 : i32
    %c0_i32_0 = arith.constant 0 : i32
    return %arg0, %c0_i32 : i32, i32
  }
}

</mosaic_0001>

<bundles_post_ra>
// kernel: tpu_custom_call.1
= control target key start
LH: loop header
LB: loop body
LE: loop exit
PB: predicated region body
PF: predicated region fallthrough
CT: control target
= control target key end

     0   :  { %vm109_vm0 = vcmask 1043456   ;;  %vm84_vm1 = vcmask 64512   ;;  %s575_s0 = inlined_call_operand.vmem [shape: bf16[16,8], index: 0, kind: input, shape index: {}]   ;;  %s576_s1 = inlined_call_operand.vmem [shape: bf16[8,128], index: 1, kind: input, shape index: {}]   ;;  %s577_s2 = inlined_call_operand.vmem [shape: f32[1,128], index: 2, kind: input, shape index: {}]   ;;  %s578_s3 = inlined_call_operand.vmem [shape: f32[1,128], index: 3, kind: input, shape index: {}]   ;;  %s579_s4 = inlined_call_operand.<no memory space> [shape: f32[1,1], index: 4, kind: input, shape index: {}]   ;;  %s580_s5 = inlined_call_operand.hbm [shape: f32[1,128], index: 5, kind: output, shape index: {}]  }
   0x1   :  { %v39_v0 = vld [vmem:[%s576_s1] sm:$0xf]  ;;  %v387_v3 = vld [vmem:[%s575_s0 + $0x10] sm:$0xff] }
   0x2   :  { %v111_v1 = vsel %vm109_vm0, %v39_v0, 0  ;;  %v385_v2 = vld [vmem:[%s575_s0] sm:$0xff]  ;;  %v391_v5 = vld [vmem:[%s575_s0 + $0x30] sm:$0xff] }
   0x3   :  { %120 = vmatpush.bf16.msra.mxu0 %v111_v1  ;;  %393 = vmatpush.bf16.msra.mxu1 %v111_v1  ;;  %v389_v4 = vld [vmem:[%s575_s0 + $0x20] sm:$0xff] }
   0x4   :  { %394 = vmatpush.bf16.msra.mxu2 %v111_v1  ;;  %395 = vmatpush.bf16.msra.mxu3 %v111_v1 }
   0x5   :  { %11 = vsyncpa [#allocation4], 0  ;;  %v386_v6 = vld [vmem:[%s575_s0 + $0x8] sm:$0xff]  ;;  %v388_v7 = vld [vmem:[%s575_s0 + $0x18] sm:$0xff]  ;;  %vm269_vm2 = vcmask 130112   ;;  %vm273_vm3 = vcmask 195712  }
   0x6   :  { %377 = vmatmul.msk.bf16.vlgmr.msra.gmra.mxu0 %vm84_vm1, %v385_v2  ;;  %379 = vmatmul.msk.bf16.vlgmr.msra.gmra.mxu1 %vm84_vm1, %v387_v3  ;;  %v390_v8 = vld [vmem:[%s575_s0 + $0x28] sm:$0xff]  ;;  %v392_v9 = vld [vmem:[%s575_s0 + $0x38] sm:$0xff]  ;;  %v494_v10 = vld [vmem:[%s577_s2] ss:$0 sm:$0xff]  ;;  %vm277_vm4 = vcmask 261312   ;;  %vm281_vm5 = vcmask 326912  }
   0x7   :  { %381 = vmatmul.msk.bf16.vlgmr.msra.gmra.mxu2 %vm84_vm1, %v389_v4  ;;  %383 = vmatmul.msk.bf16.vlgmr.msra.gmra.mxu3 %vm84_vm1, %v391_v5  ;;  %v501_v15 = vld [vmem:[%s578_s3] ss:$0 sm:$0xff]  ;;  %vm285_vm6 = vcmask 392512   ;;  %vm289_vm7 = vcmask 458112   ;;  %vm293_vm8 = vcmask 523712   ;;  %vm297_vm9 = vcmask 589312  }
   0x8   :  { %vm301_vm10 = vcmask 654912   ;;  %vm305_vm11 = vcmask 720512   ;;  %vm309_vm12 = vcmask 786112   ;;  %vm313_vm13 = vcmask 851712   ;;  %s336_s16 = sshll.u32 %s580_s5, 4  ;;  %s337_s16 = int_to_ptr.hbm [resolvable:$true] %s336_s16 }
   0x9   :  { %vm317_vm14 = vcmask 917312   ;;  %vm321_vm15 = vcmask 982912   ;;  %vm325_vm0 = vcmask 1048512  }
  0x16   :  { %378 = vmatmul.msk.bf16.gmra.mxu0 %vm84_vm1, %v386_v6  ;;  %380 = vmatmul.msk.bf16.gmra.mxu1 %vm84_vm1, %v388_v7 }
  0x17   :  { %382 = vmatmul.msk.bf16.gmra.mxu2 %vm84_vm1, %v390_v8  ;;  %384 = vmatmul.msk.bf16.gmra.mxu3 %vm84_vm1, %v392_v9 }
  0x83   :  { %v122_v11 = vpop.f32.mrf.mxu0  ;;  %v132_v12 = vpop.f32.mrf.mxu1 }
  0x84   :  { %v123_v13 = vadd.f32 %v494_v10, %v122_v11  ;;  %v133_v14 = vadd.f32 %v494_v10, %v132_v12 }
  0x86   :  { %v162_v16 = vmax.f32 %v123_v13, 0.0  ;;  %v166_v17 = vmax.f32 %v133_v14, 0.0 }
  0x88   :  { %v186_v18 = vmul.f32 %v501_v15, %v166_v17  ;;  %v182_v19 = vmul.f32 %v501_v15, %v162_v16 }
  0x8a   :  { %v142_v20 = vpop.f32.mrf.mxu2  ;;  %206 = vadd.xlane.f32.xlu2 %v186_v18  ;;  %198 = vadd.xlane.f32.xlu0 %v182_v19  ;;  %v152_v21 = vpop.f32.mrf.mxu3 }
  0x8b   :  { %v143_v22 = vadd.f32 %v494_v10, %v142_v20  ;;  %v124_v23 = vpop.f32.mrf.mxu0  ;;  %v134_v24 = vpop.f32.mrf.mxu1  ;;  %v153_v53 = vadd.f32 %v494_v10, %v152_v21  ;;  %v264_v20 = vlaneseq }
  0x8c   :  { %v125_v25 = vadd.f32 %v494_v10, %v124_v23  ;;  %v135_v28 = vadd.f32 %v494_v10, %v134_v24 }
  0x8d   :  { %v170_v26 = vmax.f32 %v143_v22, 0.0  ;;  %v174_v58 = vmax.f32 %v153_v53, 0.0  ;;  %v533_v22 = vand.u32 127, %v264_v20 }
  0x8e   :  { %v163_v27 = vmax.f32 %v125_v25, 0.0  ;;  %v167_v32 = vmax.f32 %v135_v28, 0.0 }
  0x8f   :  { %v190_v29 = vmul.f32 %v501_v15, %v170_v26  ;;  %v194_v3 = vmul.f32 %v501_v15, %v174_v58  ;;  %v267_v23 = vadd.s32 4294967288, %v533_v22  ;;  %v271_v24 = vadd.s32 4294967280, %v533_v22 }
  0x90   :  { %v183_v30 = vmul.f32 %v501_v15, %v163_v27  ;;  %v187_v40 = vmul.f32 %v501_v15, %v167_v32  ;;  %v299_v53 = vadd.s32 4294967224, %v533_v22  ;;  %v303_v58 = vadd.s32 4294967216, %v533_v22 }
  0x92   :  { %v144_v31 = vpop.f32.mrf.mxu2  ;;  %214 = vadd.xlane.f32.xlu2 %v190_v29  ;;  %200 = vadd.xlane.f32.xlu0 %v183_v30  ;;  %v154_v33 = vpop.f32.mrf.mxu3  ;;  %v275_v30 = vadd.s32 4294967272, %v533_v22 }
  0x93   :  { %v145_v34 = vadd.f32 %v494_v10, %v144_v31  ;;  %v127_v35 = vpop.f32.mrf.mxu0  ;;  %v137_v37 = vpop.f32.mrf.mxu1  ;;  %v155_v8 = vadd.f32 %v494_v10, %v154_v33  ;;  %v279_v31 = vadd.s32 4294967264, %v533_v22 }
  0x94   :  { %v128_v36 = vadd.f32 %v494_v10, %v127_v35  ;;  %v138_v41 = vadd.f32 %v494_v10, %v137_v37  ;;  %v283_v37 = vadd.s32 4294967256, %v533_v22 }
  0x95   :  { %v171_v38 = vmax.f32 %v145_v34, 0.0  ;;  %v175_v11 = vmax.f32 %v155_v8, 0.0 }
  0x96   :  { %v164_v39 = vmax.f32 %v128_v36, 0.0  ;;  %v168_v47 = vmax.f32 %v138_v41, 0.0 }
  0x97   :  { %v191_v43 = vmul.f32 %v501_v15, %v171_v38  ;;  %v195_v12 = vmul.f32 %v501_v15, %v175_v11 }
  0x98   :  { %v184_v42 = vmul.f32 %v501_v15, %v164_v39  ;;  %v188_v51 = vmul.f32 %v501_v15, %v168_v47 }
  0x9a   :  { %v147_v44 = vpop.f32.mrf.mxu2  ;;  %208 = vadd.xlane.f32.xlu2 %v187_v40  ;;  %202 = vadd.xlane.f32.xlu1 %v184_v42  ;;  %v157_v45 = vpop.f32.mrf.mxu3 }
  0x9b   :  { %v148_v46 = vadd.f32 %v494_v10, %v147_v44  ;;  %216 = vadd.xlane.f32.xlu0 %v191_v43  ;;  %v129_v49 = vpop.f32.mrf.mxu0  ;;  %v139_v60 = vpop.f32.mrf.mxu1  ;;  %v158_v61 = vadd.f32 %v494_v10, %v157_v45  ;;  %v287_v45 = vadd.s32 4294967248, %v533_v22 }
  0x9c   :  { %v130_v52 = vadd.f32 %v494_v10, %v129_v49  ;;  %v140_v0 = vadd.f32 %v494_v10, %v139_v60 }
  0x9d   :  { %v172_v48 = vmax.f32 %v148_v46, 0.0  ;;  %v176_v2 = vmax.f32 %v158_v61, 0.0  ;;  %v307_v61 = vadd.s32 4294967208, %v533_v22 }
  0x9e   :  { %v165_v56 = vmax.f32 %v130_v52, 0.0  ;;  %v169_v5 = vmax.f32 %v140_v0, 0.0 }
  0x9f   :  { %v192_v50 = vmul.f32 %v501_v15, %v172_v48  ;;  %v196_v6 = vmul.f32 %v501_v15, %v176_v2 }
  0xa0   :  { %v185_v1 = vmul.f32 %v501_v15, %v165_v56  ;;  %v189_v9 = vmul.f32 %v501_v15, %v169_v5 }
  0xa2   :  { %v149_v54 = vpop.f32.mrf.mxu2  ;;  %218 = vadd.xlane.f32.xlu1 %v192_v50  ;;  %v159_v57 = vpop.f32.mrf.mxu3  ;;  %v291_v50 = vadd.s32 4294967240, %v533_v22 }
  0xa3   :  { %v150_v55 = vadd.f32 %v494_v10, %v149_v54  ;;  %210 = vadd.xlane.f32.xlu0 %v188_v51  ;;  %v160_v63 = vadd.f32 %v494_v10, %v159_v57  ;;  %v538_v10 = vstv %s579_s4  ;;  %v295_v51 = vadd.s32 4294967232, %v533_v22  ;;  %s425_s4 = smov [#allocation3]  }
  0xa4   :  { %s334_s13 = sshll.u32 %s425_s4, 4  ;;  %s335_s13 = int_to_ptr.vmem [resolvable:$true] %s334_s13 }
  0xa5   :  { %v173_v59 = vmax.f32 %v150_v55, 0.0  ;;  %v177_v4 = vmax.f32 %v160_v63, 0.0 }
  0xa7   :  { %v193_v62 = vmul.f32 %v501_v15, %v173_v59  ;;  %v197_v7 = vmul.f32 %v501_v15, %v177_v4 }
  0xa9   :  { %220 = vadd.xlane.f32.xlu2 %v193_v62 }
  0xaa   :  { %204 = vadd.xlane.f32.xlu1 %v185_v1 }
  0xab   :  { %222 = vadd.xlane.f32.xlu0 %v194_v3  ;;  %v311_v3 = vadd.s32 4294967200, %v533_v22 }
  0xb1   :  { %226 = vadd.xlane.f32.xlu2 %v196_v6 }
  0xb2   :  { %212 = vadd.xlane.f32.xlu1 %v189_v9 }
  0xb3   :  { %228 = vadd.xlane.f32.xlu0 %v197_v7 }
  0xba   :  { %224 = vadd.xlane.f32.xlu1 %v195_v12 }
  0xfd   :  { %v199_v13 = vpop.xlane.xlu0 %198  ;;  %v207_v16 = vpop.xlane.xlu2 %206 }
  0xfe   :  { %v232_v27 = vadd.f32 %v538_v10, %v199_v13  ;;  %v236_v32 = vadd.f32 %v538_v10, %v207_v16  ;;  %v315_v13 = vadd.s32 4294967192, %v533_v22 }
 0x100   :  { %v266_v35 = vperm.slane %v232_v27, %v533_v22  ;;  %v280_v41 = vperm.slane %v236_v32, %v279_v31 }
 0x105   :  { %v201_v14 = vpop.xlane.xlu0 %200  ;;  %v215_v19 = vpop.xlane.xlu2 %214 }
 0x106   :  { %v233_v15 = vadd.f32 %v538_v10, %v201_v14  ;;  %v240_v52 = vadd.f32 %v538_v10, %v215_v19  ;;  %v319_v14 = vadd.s32 4294967184, %v533_v22 }
 0x108   :  { %v268_v29 = vperm.slane %v233_v15, %v267_v23  ;;  %v296_v0 = vperm.slane %v240_v52, %v295_v51 }
 0x10a   :  { %v270_v38 = vsel %vm269_vm2, %v268_v29, %v266_v35 }
 0x10d   :  { %v203_v17 = vpop.xlane.xlu1 %202  ;;  %v209_v28 = vpop.xlane.xlu2 %208 }
 0x10e   :  { %v217_v18 = vpop.xlane.xlu0 %216  ;;  %v234_v25 = vadd.f32 %v538_v10, %v203_v17  ;;  %v237_v39 = vadd.f32 %v538_v10, %v209_v28  ;;  %v323_v17 = vadd.s32 4294967176, %v533_v22 }
 0x10f   :  { %v241_v55 = vadd.f32 %v538_v10, %v217_v18 }
 0x110   :  { %v272_v33 = vperm.slane %v234_v25, %v271_v24  ;;  %v284_v49 = vperm.slane %v237_v39, %v283_v37 }
 0x111   :  { %v300_v2 = vperm.slane %v241_v55, %v299_v53 }
 0x112   :  { %v274_v42 = vsel %vm273_vm3, %v272_v33, %v270_v38 }
 0x115   :  { %v219_v21 = vpop.xlane.xlu1 %218 }
 0x116   :  { %v211_v26 = vpop.xlane.xlu0 %210  ;;  %v242_v59 = vadd.f32 %v538_v10, %v219_v21 }
 0x117   :  { %v238_v46 = vadd.f32 %v538_v10, %v211_v26 }
 0x118   :  { %v304_v6 = vperm.slane %v242_v59, %v303_v58 }
 0x119   :  { %v288_v60 = vperm.slane %v238_v46, %v287_v45 }
 0x11c   :  { %v221_v43 = vpop.xlane.xlu2 %220 }
 0x11d   :  { %v205_v34 = vpop.xlane.xlu1 %204  ;;  %v243_v62 = vadd.f32 %v538_v10, %v221_v43 }
 0x11e   :  { %v235_v36 = vadd.f32 %v538_v10, %v205_v34  ;;  %v223_v48 = vpop.xlane.xlu0 %222 }
 0x11f   :  { %v244_v7 = vadd.f32 %v538_v10, %v223_v48  ;;  %v308_v11 = vperm.slane %v243_v62, %v307_v61 }
 0x120   :  { %v276_v40 = vperm.slane %v235_v36, %v275_v30 }
 0x121   :  { %v312_v15 = vperm.slane %v244_v7, %v311_v3 }
 0x122   :  { %v278_v44 = vsel %vm277_vm4, %v276_v40, %v274_v42 }
 0x123   :  { %v282_v47 = vsel %vm281_vm5, %v280_v41, %v278_v44 }
 0x124   :  { %v286_v57 = vsel %vm285_vm6, %v284_v49, %v282_v47  ;;  %v227_v5 = vpop.xlane.xlu2 %226 }
 0x125   :  { %v213_v54 = vpop.xlane.xlu1 %212  ;;  %v290_v1 = vsel %vm289_vm7, %v288_v60, %v286_v57  ;;  %v246_v16 = vadd.f32 %v538_v10, %v227_v5 }
 0x126   :  { %v239_v56 = vadd.f32 %v538_v10, %v213_v54  ;;  %v229_v9 = vpop.xlane.xlu0 %228 }
 0x127   :  { %v247_v20 = vadd.f32 %v538_v10, %v229_v9  ;;  %v320_v25 = vperm.slane %v246_v16, %v319_v14 }
 0x128   :  { %v292_v63 = vperm.slane %v239_v56, %v291_v50 }
 0x129   :  { %v324_v26 = vperm.slane %v247_v20, %v323_v17 }
 0x12a   :  { %v294_v4 = vsel %vm293_vm8, %v292_v63, %v290_v1 }
 0x12b   :  { %v298_v8 = vsel %vm297_vm9, %v296_v0, %v294_v4 }
 0x12c   :  { %v302_v12 = vsel %vm301_vm10, %v300_v2, %v298_v8 }
 0x12d   :  { %v225_v18 = vpop.xlane.xlu1 %224  ;;  %v306_v19 = vsel %vm305_vm11, %v304_v6, %v302_v12 }
 0x12e   :  { %v245_v21 = vadd.f32 %v538_v10, %v225_v18  ;;  %v310_v23 = vsel %vm309_vm12, %v308_v11, %v306_v19 }
 0x12f   :  { %v314_v22 = vsel %vm313_vm13, %v312_v15, %v310_v23 }
 0x130   :  { %v316_v24 = vperm.slane %v245_v21, %v315_v13 }
 0x132   :  { %v318_v27 = vsel %vm317_vm14, %v316_v24, %v314_v22 }
 0x133   :  { %v322_v28 = vsel %vm321_vm15, %v320_v25, %v318_v27 }
 0x134   :  { %v326_v10 = vsel %vm325_vm0, %v324_v26, %v322_v28 }
 0x135   :  { %328 = vst [vmem:[#allocation3] sm:$0x1] %v326_v10 }
 0x136   :  { %339 = dma.vmem_to_hbm [thread:$0]  %s335_s13, 16, %s337_s16, [#allocation4]  }
 0x137   :  { %423 = dma.done.wait [#allocation4], 16  }
 0x138   :  { %424 = vsyncadd [#allocation4], 4294967280 }
 0x139   :  { %344 = vsyncpa [#allocation4], 1 }

</bundles_post_ra>
